<compile_context>
chip_gen: v5e
topology: v5e:2x2
jax: 0.10.0
libtpu: 0.0.40
codegen_flags: <defaults>
</compile_context>

<pallas_src>
import jax
import jax.numpy as jnp
from jax.experimental import pallas as pl
from jax.experimental.pallas import tpu as pltpu


# Preferred lane-dense last dims, widest first (all multiples of 128).
_LANE_WIDTHS = (8192, 4096, 2048, 1024, 512, 256, 128)
_MAX_TILE_BYTES = 16 * 1024 * 1024  # upper cap on a single row tile


def _identity_copy_kernel(x_ref, o_ref):
    # Straight VMEM -> VMEM copy of the current tile.
    o_ref[...] = x_ref[...]


def _vmem_capacity_bytes() -> int:
    """Best-effort physical VMEM query; conservative default if unavailable."""
    try:
        return int(pltpu.get_tpu_info().vmem_capacity_bytes)
    except Exception:
        return 64 * 1024 * 1024  # v7x per-TC size == the most conservative


def identity(x: jax.Array) -> jax.Array:
    """Pallas implementation of `Identity.forward(x) -> x` (fresh copy)."""
    orig_shape = x.shape
    n = x.size
    if n == 0:
        return x  # nothing to move

    itemsize = jnp.dtype(x.dtype).itemsize
    # Native sublane packing: f32 -> 8, bf16 -> 16, int8/fp8 -> 32 rows/vreg.
    sublane_mult = max(8, 32 // itemsize)

    # ---- lane-dense 2-D view (pad odd sizes up to a 1024-elem multiple) ----
    flat = x.reshape(-1)
    if n % 128 == 0:
        n_pad = n
    else:
        n_pad = ((n + 1023) // 1024) * 1024
        flat = jnp.pad(flat, (0, n_pad - n))
    cols = next(c for c in _LANE_WIDTHS if n_pad % c == 0)  # >=128 always hits
    rows = n_pad // cols
    x2 = flat.reshape(rows, cols)

    # ---- generation-aware tile sizing ----
    vmem_cap = _vmem_capacity_bytes()                 # 128 MiB v5e/v6e, 64 MiB v7x
    vmem_limit = min((vmem_cap * 3) // 4, 80 * 1024 * 1024)
    # Double-buffered in + out = 4x tile; /5 leaves headroom.
    tile_bytes = min(vmem_limit // 5, _MAX_TILE_BYTES)

    row_bytes = cols * itemsize
    block_rows = max(1, tile_bytes // row_bytes)
    if block_rows >= rows:
        if rows >= 2 * sublane_mult:
            # Keep >= 2 grid steps so v7x's two TensorCores split the copy.
            block_rows = max(
                sublane_mult, (((rows + 1) // 2) // sublane_mult) * sublane_mult
            )
        else:
            block_rows = rows  # full extent: always legal
    else:
        block_rows = max(sublane_mult, (block_rows // sublane_mult) * sublane_mult)

    grid = (pl.cdiv(rows, block_rows),)

    out2 = pl.pallas_call(
        _identity_copy_kernel,
        out_shape=jax.ShapeDtypeStruct((rows, cols), x.dtype),
        grid=grid,
        in_specs=[pl.BlockSpec((block_rows, cols), lambda i: (i, 0))],
        out_specs=pl.BlockSpec((block_rows, cols), lambda i: (i, 0)),
        compiler_params=pltpu.CompilerParams(
            dimension_semantics=("parallel",),  # shards grid across v7x's 2 TCs
            vmem_limit_bytes=vmem_limit,
        ),
        cost_estimate=pl.CostEstimate(
            flops=0, transcendentals=0, bytes_accessed=2 * n_pad * itemsize
        ),
    )(x2)

    if n_pad != n:
        return out2.reshape(-1)[:n].reshape(orig_shape)
    return out2.reshape(orig_shape)


if __name__ == "__main__":
    key = jax.random.PRNGKey(0)

    # Typical NCHW conv input: batch=2, channels=4, 16x16 spatial (f32).
    x = jax.random.normal(key, (2, 4, 16, 16), dtype=jnp.float32)
    y = identity(x)

    # Also exercise the non-128-divisible fallback (padded path).
    x_odd = jax.random.normal(jax.random.PRNGKey(0), (3, 5, 7), dtype=jnp.float32)
    y_odd = identity(x_odd)

    jax.block_until_ready((y, y_odd))

    for inp, out in ((x, y), (x_odd, y_odd)):
        assert out.shape == inp.shape, (out.shape, inp.shape)
        assert out.dtype == inp.dtype, (out.dtype, inp.dtype)
        assert bool(jnp.all(out == inp)), "Identity kernel output mismatch"

    print("KERNEL_OK")
</pallas_src>

<mosaic_0001>
module attributes {stable_mosaic.version = 11 : i64} {
  func.func @_identity_copy_kernel(%arg0: i32, %arg1: memref<1x2048xf32, #tpu.memory_space<vmem>>, %arg2: memref<1x2048xf32, #tpu.memory_space<vmem>>) attributes {dimension_semantics = [#tpu.dimension_semantics<parallel>], iteration_bounds = array<i64: 1>, scalar_prefetch = 0 : i64, scratch_operands = 0 : i64, tpu.core_type = #tpu.core_type<tc>, window_params = [{transform_indices = @transform_0, window_bounds = array<i64: 1, 2048>}, {transform_indices = @transform_1, window_bounds = array<i64: 1, 2048>}]} {
    %c0 = arith.constant 0 : index
    %c0_0 = arith.constant 0 : index
    %0 = vector.load %arg1[%c0, %c0_0] : memref<1x2048xf32, #tpu.memory_space<vmem>>, vector<1x2048xf32>
    %c0_1 = arith.constant 0 : index
    %c0_2 = arith.constant 0 : index
    %1 = vector.load %arg2[%c0_1, %c0_2] : memref<1x2048xf32, #tpu.memory_space<vmem>>, vector<1x2048xf32>
    tpu.vector_store %arg2[%c0_1, %c0_2], %0 {strides = array<i32>} : memref<1x2048xf32, #tpu.memory_space<vmem>>, vector<1x2048xf32>,
    return
  }
  func.func @transform_0(%arg0: i32) -> (i32, i32) {
    %c0_i32 = arith.constant 0 : i32
    %c0_i32_0 = arith.constant 0 : i32
    return %arg0, %c0_i32 : i32, i32
  }
  func.func @transform_1(%arg0: i32) -> (i32, i32) {
    %c0_i32 = arith.constant 0 : i32
    %c0_i32_0 = arith.constant 0 : i32
    return %arg0, %c0_i32 : i32, i32
  }
}

</mosaic_0001>

<bundles_post_ra>
// kernel: tpu_custom_call.1
= control target key start
LH: loop header
LB: loop body
LE: loop exit
PB: predicated region body
PF: predicated region fallthrough
CT: control target
= control target key end

     0   :  { %6 = vsyncpa [#allocation3], 0  ;;  %s116_s0 = inlined_call_operand.hbm [shape: f32[1,2048], index: 0, kind: input, shape index: {}]   ;;  %s117_s1 = inlined_call_operand.hbm [shape: f32[1,2048], index: 1, kind: output, shape index: {}]  }
   0x1   :  { %7 = vsyncpa [#allocation4], 0  ;;  %s13_s8 = sshll.u32 %s116_s0, 4  ;;  %s98_s9 = smov [#allocation2]   ;;  %s14_s8 = int_to_ptr.hbm [resolvable:$true] %s13_s8 }
   0x2   :  { %s15_s10 = sshll.u32 %s98_s9, 4  ;;  %s16_s10 = int_to_ptr.vmem [resolvable:$true] %s15_s10 }
   0x3   :  { %18 = dma.hbm_to_vmem [thread:$0]  %s14_s8, 256, %s16_s10, [#allocation3]  }
   0x4   :  { %94 = dma.done.wait [#allocation3], 256  }
   0x5   :  { %95 = vsyncadd [#allocation3], 4294967040  ;;  %s99_s11 = smov [#allocation5]   ;;  %s34_s15 = sshll.u32 %s117_s1, 4  ;;  %v23_v0 = vld [vmem:[#allocation2] sm:$0xff]  ;;  %v24_v1 = vld [vmem:[#allocation2 + $0x8] sm:$0xff]  ;;  %s35_s15 = int_to_ptr.hbm [resolvable:$true] %s34_s15 }
   0x6   :  { %s32_s12 = sshll.u32 %s99_s11, 4  ;;  %25 = vst [vmem:[#allocation5] sm:$0xff] %v23_v0  ;;  %s33_s12 = int_to_ptr.vmem [resolvable:$true] %s32_s12 }
   0x7   :  { %26 = vst [vmem:[#allocation5 + $0x8] sm:$0xff] %v24_v1 }
   0x8   :  { %37 = dma.vmem_to_hbm [thread:$0]  %s33_s12, 256, %s35_s15, [#allocation4]  }
   0x9   :  { %96 = dma.done.wait [#allocation4], 256  }
   0xa   :  { %97 = vsyncadd [#allocation4], 4294967040 }
   0xb   :  { %42 = vsyncpa [#allocation3], 1 }
   0xc   :  { %43 = vsyncpa [#allocation4], 1 }

</bundles_post_ra>
